<compile_context>
chip_gen: v5e
topology: v5e:2x2
jax: 0.10.0
libtpu: 0.0.40
codegen_flags: <defaults>
</compile_context>

<pallas_src>
import jax
import jax.numpy as jnp
from jax.experimental import pallas as pl
from jax.experimental.pallas import tpu as pltpu


def _gru_kernel(x_ref, h_ref, wx_ref, whzr_ref, whc_ref, out_ref):
    """One batch tile of the GRU cell.

    x_ref:    (tb, I)      activations
    h_ref:    (tb, H)      previous hidden state
    wx_ref:   (I, 3H)      fused x-side weights  [W_z_x | W_r_x | W_c_x]
    whzr_ref: (H, 2H)      fused h-side weights  [W_z_h | W_r_h]
    whc_ref:  (H, H)       candidate h-side weights
    out_ref:  (tb, H)      next hidden state (f32)
    """
    w_dtype = wx_ref.dtype
    hidden = h_ref.shape[-1]

    h_f32 = h_ref[...].astype(jnp.float32)
    x_w = x_ref[...].astype(w_dtype)
    h_w = h_ref[...].astype(w_dtype)

    # One wide x-side matmul (all three gates) + one fused h-side matmul (z, r).
    gx = jnp.dot(x_w, wx_ref[...], preferred_element_type=jnp.float32)     # (tb, 3H)
    gh = jnp.dot(h_w, whzr_ref[...], preferred_element_type=jnp.float32)   # (tb, 2H)

    z = jax.nn.sigmoid(gx[:, :hidden] + gh[:, :hidden])
    r = jax.nn.sigmoid(gx[:, hidden:2 * hidden] + gh[:, hidden:])

    # Candidate: depends on r, so its h-side matmul cannot be pre-fused.
    rh = (r * h_f32).astype(w_dtype)
    cand = jnp.dot(rh, whc_ref[...], preferred_element_type=jnp.float32)
    h_tilde = jnp.tanh(cand + gx[:, 2 * hidden:])

    out_ref[...] = ((1.0 - z) * h_f32 + z * h_tilde).astype(out_ref.dtype)


def init_params(key, input_size, hidden_size):
    """PyTorch-layout params, U(-sqrt_k, sqrt_k) like reset_parameters()."""
    sqrt_k = (1.0 / hidden_size) ** 0.5
    keys = jax.random.split(key, 3)
    shape = (hidden_size, hidden_size + input_size)
    names = ["W_z", "W_r", "W"]
    return {
        name: jax.random.uniform(k, shape, dtype=jnp.float32,
                                 minval=-sqrt_k, maxval=sqrt_k)
        for name, k in zip(names, keys)
    }


def prepare_params(params, hidden_size, dtype=jnp.float32):
    """One-time weight prep (transpose + fuse). Amortized across timesteps.

    PyTorch linear: y = concat_hx @ W_g.T, with concat_hx = [prev_h, x], so
    columns [:H] of W_g act on prev_h and columns [H:] act on x.
    """
    H = hidden_size
    W_z, W_r, W = params["W_z"], params["W_r"], params["W"]
    wx_all = jnp.concatenate(
        [W_z[:, H:].T, W_r[:, H:].T, W[:, H:].T], axis=1)          # (I, 3H)
    wh_zr = jnp.concatenate([W_z[:, :H].T, W_r[:, :H].T], axis=1)  # (H, 2H)
    wh_c = W[:, :H].T                                              # (H, H)
    return {
        "wx_all": wx_all.astype(dtype),
        "wh_zr": wh_zr.astype(dtype),
        "wh_c": wh_c.astype(dtype),
    }


def gru_cell(x, prev_state, prep):
    """GRUCell forward. x: (B, I); returns next_h: (B, H) in float32."""
    batch, input_size = x.shape
    hidden = prep["wh_c"].shape[0]

    prev_h = (jnp.zeros((batch, hidden), dtype=jnp.float32)
              if prev_state is None else prev_state.astype(jnp.float32))
    x = x.astype(jnp.float32)

    # Batch tile: full batch for small B (block == array dim is always legal),
    # otherwise a multiple-of-8 tile so the grid pipelines over batch.
    if batch <= 128 or batch % 128 != 0:
        tb = batch
    else:
        tb = 128
    grid = (batch // tb,)

    next_h = pl.pallas_call(
        _gru_kernel,
        out_shape=jax.ShapeDtypeStruct((batch, hidden), jnp.float32),
        grid_spec=pltpu.PrefetchScalarGridSpec(
            num_scalar_prefetch=0,
            grid=grid,
            in_specs=[
                pl.BlockSpec((tb, input_size), lambda i: (i, 0)),
                pl.BlockSpec((tb, hidden), lambda i: (i, 0)),
                # Weights: constant block index -> stay VMEM-resident across
                # batch tiles (no re-DMA per grid step).
                pl.BlockSpec((input_size, 3 * hidden), lambda i: (0, 0)),
                pl.BlockSpec((hidden, 2 * hidden), lambda i: (0, 0)),
                pl.BlockSpec((hidden, hidden), lambda i: (0, 0)),
            ],
            out_specs=pl.BlockSpec((tb, hidden), lambda i: (i, 0)),
        ),
        compiler_params=pltpu.CompilerParams(
            dimension_semantics=("parallel",)),
    )(x, prev_h, prep["wx_all"], prep["wh_zr"], prep["wh_c"])
    return next_h


def _reference_forward(x, prev_h, params):
    """Pure-JAX reference matching the PyTorch GRUCell (bias=False)."""
    concat_hx = jnp.concatenate((prev_h, x), axis=1)
    z = jax.nn.sigmoid(concat_hx @ params["W_z"].T)
    r = jax.nn.sigmoid(concat_hx @ params["W_r"].T)
    h_tilde = jnp.tanh(
        jnp.concatenate((r * prev_h, x), axis=1) @ params["W"].T)
    return (1.0 - z) * prev_h + z * h_tilde


if __name__ == "__main__":
    input_size = 16
    hidden_size = 32
    batch = 4

    key = jax.random.PRNGKey(0)
    k_param, k_x, k_h = jax.random.split(key, 3)

    params = init_params(k_param, input_size, hidden_size)
    x = jax.random.normal(k_x, (batch, input_size), dtype=jnp.float32)
    prev_h = jax.random.normal(k_h, (batch, hidden_size), dtype=jnp.float32)

    ref = _reference_forward(x, prev_h, params)

    # f32 path: tight correctness check against the reference.
    prep_f32 = prepare_params(params, hidden_size, dtype=jnp.float32)
    ht = jax.block_until_ready(gru_cell(x, prev_h, prep_f32))
    assert ht.shape == (batch, hidden_size)
    assert jnp.allclose(ht, ref, atol=2e-5, rtol=1e-5), "f32 mismatch vs reference"

    # bf16-weight path (halved weight DMA bytes, bf16 MXU, f32 accumulation):
    # loose numerical check.
    prep_bf16 = prepare_params(params, hidden_size, dtype=jnp.bfloat16)
    ht_bf16 = jax.block_until_ready(gru_cell(x, prev_h, prep_bf16))
    assert ht_bf16.shape == (batch, hidden_size)
    assert jnp.allclose(ht_bf16, ref, atol=5e-2, rtol=5e-2), "bf16 mismatch vs reference"

    # prev_state=None path (zeros hidden state), as in the PyTorch module.
    ht_none = jax.block_until_ready(gru_cell(x, None, prep_f32))
    ref_none = _reference_forward(x, jnp.zeros((batch, hidden_size), jnp.float32), params)
    assert jnp.allclose(ht_none, ref_none, atol=2e-5, rtol=1e-5), "None-state mismatch"

    print("KERNEL_OK")
</pallas_src>

<mosaic_0001>
module attributes {stable_mosaic.version = 11 : i64} {
  func.func @_gru_kernel(%arg0: i32, %arg1: memref<4x16xf32, #tpu.memory_space<vmem>>, %arg2: memref<4x32xf32, #tpu.memory_space<vmem>>, %arg3: memref<16x96xf32, #tpu.memory_space<vmem>>, %arg4: memref<32x64xf32, #tpu.memory_space<vmem>>, %arg5: memref<32x32xf32, #tpu.memory_space<vmem>>, %arg6: memref<4x32xf32, #tpu.memory_space<vmem>>) attributes {dimension_semantics = [#tpu.dimension_semantics<parallel>], iteration_bounds = array<i64: 1>, scalar_prefetch = 0 : i64, scratch_operands = 0 : i64, tpu.core_type = #tpu.core_type<tc>, window_params = [{transform_indices = @transform_0, window_bounds = array<i64: 4, 16>}, {transform_indices = @transform_1, window_bounds = array<i64: 4, 32>}, {pipeline_mode = #tpu.pipeline_mode<synchronous>, transform_indices = @transform_2, window_bounds = array<i64: 16, 96>}, {pipeline_mode = #tpu.pipeline_mode<synchronous>, transform_indices = @transform_3, window_bounds = array<i64: 32, 64>}, {pipeline_mode = #tpu.pipeline_mode<synchronous>, transform_indices = @transform_4, window_bounds = array<i64: 32, 32>}, {transform_indices = @transform_5, window_bounds = array<i64: 4, 32>}]} {
    %c0 = arith.constant 0 : index
    %c0_0 = arith.constant 0 : index
    %0 = vector.load %arg2[%c0, %c0_0] : memref<4x32xf32, #tpu.memory_space<vmem>>, vector<4x32xf32>
    %c0_1 = arith.constant 0 : index
    %c0_2 = arith.constant 0 : index
    %1 = vector.load %arg1[%c0_1, %c0_2] : memref<4x16xf32, #tpu.memory_space<vmem>>, vector<4x16xf32>
    %c0_3 = arith.constant 0 : index
    %c0_4 = arith.constant 0 : index
    %2 = vector.load %arg2[%c0_3, %c0_4] : memref<4x32xf32, #tpu.memory_space<vmem>>, vector<4x32xf32>
    %c0_5 = arith.constant 0 : index
    %c0_6 = arith.constant 0 : index
    %3 = vector.load %arg3[%c0_5, %c0_6] : memref<16x96xf32, #tpu.memory_space<vmem>>, vector<16x96xf32>
    %cst = arith.constant dense<0.000000e+00> : vector<4x96xf32>
    %4 = tpu.matmul %1, %3, %cst {dimension_numbers = #tpu.dot_dimension_numbers<[1], [0], [0], [1], [0, 0, 1, 1], [], []>} : vector<4x16xf32>, vector<16x96xf32>, vector<4x96xf32> -> vector<4x96xf32>
    %c0_7 = arith.constant 0 : index
    %c0_8 = arith.constant 0 : index
    %5 = vector.load %arg4[%c0_7, %c0_8] : memref<32x64xf32, #tpu.memory_space<vmem>>, vector<32x64xf32>
    %cst_9 = arith.constant dense<0.000000e+00> : vector<4x64xf32>
    %6 = tpu.matmul %2, %5, %cst_9 {dimension_numbers = #tpu.dot_dimension_numbers<[1], [0], [0], [1], [0, 0, 1, 1], [], []>} : vector<4x32xf32>, vector<32x64xf32>, vector<4x64xf32> -> vector<4x64xf32>
    %7 = vector.extract_strided_slice %4 {offsets = [0, 0], sizes = [4, 32], strides = [1, 1]} : vector<4x96xf32> to vector<4x32xf32>
    %8 = vector.extract_strided_slice %6 {offsets = [0, 0], sizes = [4, 32], strides = [1, 1]} : vector<4x64xf32> to vector<4x32xf32>
    %9 = arith.addf %7, %8 : vector<4x32xf32>
    %10 = arith.negf %9 : vector<4x32xf32>
    %11 = math.exp %10 : vector<4x32xf32>
    %cst_10 = arith.constant 1.000000e+00 : f32
    %12 = vector.broadcast %cst_10 : f32 to vector<4x32xf32>
    %13 = arith.addf %12, %11 : vector<4x32xf32>
    %14 = arith.divf %12, %13 : vector<4x32xf32>
    %15 = vector.extract_strided_slice %4 {offsets = [0, 32], sizes = [4, 32], strides = [1, 1]} : vector<4x96xf32> to vector<4x32xf32>
    %16 = vector.extract_strided_slice %6 {offsets = [0, 32], sizes = [4, 32], strides = [1, 1]} : vector<4x64xf32> to vector<4x32xf32>
    %17 = arith.addf %15, %16 : vector<4x32xf32>
    %18 = arith.negf %17 : vector<4x32xf32>
    %19 = math.exp %18 : vector<4x32xf32>
    %cst_11 = arith.constant 1.000000e+00 : f32
    %20 = vector.broadcast %cst_11 : f32 to vector<4x32xf32>
    %21 = arith.addf %20, %19 : vector<4x32xf32>
    %22 = arith.divf %20, %21 : vector<4x32xf32>
    %23 = arith.mulf %22, %0 : vector<4x32xf32>
    %c0_12 = arith.constant 0 : index
    %c0_13 = arith.constant 0 : index
    %24 = vector.load %arg5[%c0_12, %c0_13] : memref<32x32xf32, #tpu.memory_space<vmem>>, vector<32x32xf32>
    %cst_14 = arith.constant dense<0.000000e+00> : vector<4x32xf32>
    %25 = tpu.matmul %23, %24, %cst_14 {dimension_numbers = #tpu.dot_dimension_numbers<[1], [0], [0], [1], [0, 0, 1, 1], [], []>} : vector<4x32xf32>, vector<32x32xf32>, vector<4x32xf32> -> vector<4x32xf32>
    %26 = vector.extract_strided_slice %4 {offsets = [0, 64], sizes = [4, 32], strides = [1, 1]} : vector<4x96xf32> to vector<4x32xf32>
    %27 = arith.addf %25, %26 : vector<4x32xf32>
    %28 = math.tanh %27 : vector<4x32xf32>
    %cst_15 = arith.constant 1.000000e+00 : f32
    %29 = vector.broadcast %cst_15 : f32 to vector<4x32xf32>
    %30 = arith.subf %29, %14 : vector<4x32xf32>
    %31 = arith.mulf %30, %0 : vector<4x32xf32>
    %32 = arith.mulf %14, %28 : vector<4x32xf32>
    %33 = arith.addf %31, %32 : vector<4x32xf32>
    %c0_16 = arith.constant 0 : index
    %c0_17 = arith.constant 0 : index
    %34 = vector.load %arg6[%c0_16, %c0_17] : memref<4x32xf32, #tpu.memory_space<vmem>>, vector<4x32xf32>
    tpu.vector_store %arg6[%c0_16, %c0_17], %33 {strides = array<i32>} : memref<4x32xf32, #tpu.memory_space<vmem>>, vector<4x32xf32>,
    return
  }
  func.func @transform_0(%arg0: i32) -> (i32, i32) {
    %c0_i32 = arith.constant 0 : i32
    %c0_i32_0 = arith.constant 0 : i32
    return %arg0, %c0_i32 : i32, i32
  }
  func.func @transform_1(%arg0: i32) -> (i32, i32) {
    %c0_i32 = arith.constant 0 : i32
    %c0_i32_0 = arith.constant 0 : i32
    return %arg0, %c0_i32 : i32, i32
  }
  func.func @transform_2(%arg0: i32) -> (i32, i32) {
    %c0_i32 = arith.constant 0 : i32
    %c0_i32_0 = arith.constant 0 : i32
    %c0_i32_1 = arith.constant 0 : i32
    return %c0_i32, %c0_i32_0 : i32, i32
  }
  func.func @transform_3(%arg0: i32) -> (i32, i32) {
    %c0_i32 = arith.constant 0 : i32
    %c0_i32_0 = arith.constant 0 : i32
    %c0_i32_1 = arith.constant 0 : i32
    return %c0_i32, %c0_i32_0 : i32, i32
  }
  func.func @transform_4(%arg0: i32) -> (i32, i32) {
    %c0_i32 = arith.constant 0 : i32
    %c0_i32_0 = arith.constant 0 : i32
    %c0_i32_1 = arith.constant 0 : i32
    return %c0_i32, %c0_i32_0 : i32, i32
  }
  func.func @transform_5(%arg0: i32) -> (i32, i32) {
    %c0_i32 = arith.constant 0 : i32
    %c0_i32_0 = arith.constant 0 : i32
    return %arg0, %c0_i32 : i32, i32
  }
}

</mosaic_0001>

<bundles_post_ra>
// kernel: tpu_custom_call.1
= control target key start
LH: loop header
LB: loop body
LE: loop exit
PB: predicated region body
PF: predicated region fallthrough
CT: control target
= control target key end

     0   :  { %10 = vsyncpa [#allocation3], 0  ;;  %s468_s0 = inlined_call_operand.hbm [shape: f32[4,16], index: 0, kind: input, shape index: {}]   ;;  %s469_s1 = inlined_call_operand.hbm [shape: f32[4,32], index: 1, kind: input, shape index: {}]   ;;  %s470_s2 = inlined_call_operand.hbm [shape: f32[16,96], index: 2, kind: input, shape index: {}]   ;;  %s471_s3 = inlined_call_operand.hbm [shape: f32[32,64], index: 3, kind: input, shape index: {}]   ;;  %s472_s4 = inlined_call_operand.hbm [shape: f32[32,32], index: 4, kind: input, shape index: {}]   ;;  %s473_s5 = inlined_call_operand.hbm [shape: f32[4,32], index: 5, kind: output, shape index: {}]  }
   0x1   :  { %11 = vsyncpa [#allocation6], 0 }
   0x2   :  { %12 = vsyncpa [#allocation9], 0  ;;  %s30_s20 = sshll.u32 %s469_s1, 4  ;;  %s31_s20 = int_to_ptr.hbm [resolvable:$true] %s30_s20 }
   0x3   :  { %13 = vsyncpa [#allocation4], 0  ;;  %s407_s21 = smov [#allocation5]   ;;  %s53_s25 = sshll.u32 %s471_s3, 4  ;;  %s54_s25 = int_to_ptr.hbm [resolvable:$true] %s53_s25 }
   0x4   :  { %s32_s22 = sshll.u32 %s407_s21, 4  ;;  %s408_s26 = smov [#allocation8]   ;;  %s33_s22 = int_to_ptr.vmem [resolvable:$true] %s32_s22 }
   0x5   :  { %35 = dma.hbm_to_vmem [thread:$0]  %s31_s20, 64, %s33_s22, [#allocation6]  }
   0x6   :  { %s55_s27 = sshll.u32 %s408_s26, 4  ;;  %s19_s30 = sshll.u32 %s468_s0, 4  ;;  %s56_s27 = int_to_ptr.vmem [resolvable:$true] %s55_s27  ;;  %s20_s30 = int_to_ptr.hbm [resolvable:$true] %s19_s30 }
   0x7   :  { %s409_s1 = smov 128   ;;  %s410_s6 = smov 8  }
   0x8   :  { %61 = dma.hbm_to_vmem [thread:$0]  %s54_s25, 512, %s56_s27, [#allocation9], %s409_s1, %s409_s1, %s410_s6  }
   0x9   :  { %s40_s9 = sshll.u32 %s470_s2, 4  ;;  %s411_s10 = smov [#allocation2]   ;;  %s41_s9 = int_to_ptr.hbm [resolvable:$true] %s40_s9 }
   0xa   :  { %s21_s11 = sshll.u32 %s411_s10, 4  ;;  %s412_s3 = smov [#allocation7]   ;;  %s22_s11 = int_to_ptr.vmem [resolvable:$true] %s21_s11 }
   0xb   :  { %24 = dma.hbm_to_vmem [thread:$0]  %s20_s30, 64, %s22_s11, [#allocation3]  }
   0xc   :  { %s42_s12 = sshll.u32 %s412_s3, 4  ;;  %s66_s0 = sshll.u32 %s472_s4, 4  ;;  %s43_s12 = int_to_ptr.vmem [resolvable:$true] %s42_s12  ;;  %s67_s0 = int_to_ptr.hbm [resolvable:$true] %s66_s0 }
   0xd   :  { %48 = dma.hbm_to_vmem [thread:$0]  %s41_s9, 256, %s43_s12, [#allocation6], %s409_s1, %s409_s1, %s410_s6  }
   0xe   :  { %s413_s15 = smov [#allocation10]  }
   0xf   :  { %s68_s16 = sshll.u32 %s413_s15, 4  ;;  %s69_s16 = int_to_ptr.vmem [resolvable:$true] %s68_s16 }
  0x10   :  { %74 = dma.hbm_to_vmem [thread:$0]  %s67_s0, 512, %s69_s16, [#allocation9], %s409_s1, %s409_s1, %s410_s6  }
  0x11   :  { %399 = dma.done.wait [#allocation3], 64  }
  0x12   :  { %400 = vsyncadd [#allocation3], 4294967232 }
  0x13   :  { %401 = dma.done.wait [#allocation6], 320  }
  0x14   :  { %402 = vsyncadd [#allocation6], 4294966976 }
  0x15   :  { %403 = dma.done.wait [#allocation9], 1024  }
  0x16   :  { %404 = vsyncadd [#allocation9], 4294966272  ;;  %v126_v0 = vld [vmem:[#allocation8 + $0x18] sm:$0xff]  ;;  %v125_v1 = vld [vmem:[#allocation8 + $0x10] sm:$0xff]  ;;  %vm99_vm0 = vcmask 130048   ;;  %s414_s2 = smov 32  }
  0x17   :  { %v98_v2 = vld [vmem:[#allocation7 + $0x8] sm:$0xff]  ;;  %143 = vmatpush.msra.mxu1 %v126_v0  ;;  %v97_v3 = vld [vmem:[#allocation7] sm:$0xff]  ;;  %v124_v4 = vld [vmem:[#allocation8 + $0x8] sm:$0xff]  ;;  %vm127_vm1 = vcmask 261120   ;;  %s415_s4 = smov 64   ;;  %s416_s17 = smov 96  }
  0x18   :  { %117 = vmatpush.msra.mxu0 %v98_v2  ;;  %v96_v5 = vld [vmem:[#allocation2] sm:$0xf]  ;;  %v95_v6 = vld [vmem:[#allocation5] sm:$0xf]  ;;  %v123_v7 = vld [vmem:[#allocation8] sm:$0xff]  ;;  %s417_s18 = smov [#allocation11]  }
  0x19   :  { %144 = vmatpush.msra.mxu1 %v125_v1  ;;  %171 = vrot.lane.b32.xlu0 %v95_v6, %s414_s2  ;;  %v178_v26 = vld [vmem:[#allocation10 + $0x18] sm:$0xff]  ;;  %v177_v27 = vld [vmem:[#allocation10 + $0x10] sm:$0xff]  ;;  %v176_v28 = vld [vmem:[#allocation10 + $0x8] sm:$0xff]  ;;  %s220_s19 = sshll.u32 %s417_s18, 4  ;;  %s222_s22 = sshll.u32 %s473_s5, 4  ;;  %vm213_vm6 = vcmask 257024   ;;  %s221_s19 = int_to_ptr.vmem [resolvable:$true] %s220_s19  ;;  %s223_s22 = int_to_ptr.hbm [resolvable:$true] %s222_s22 }
  0x1a   :  { %118 = vmatpush.msra.mxu0 %v97_v3  ;;  %200 = vmatpush.msra.mxu2 %v178_v26  ;;  %v175_v29 = vld [vmem:[#allocation10] sm:$0xff] }
  0x1b   :  { %234 = vmatmul.msk.f32.vlgmr.msra.gmra.mxu0 %vm99_vm0, %v96_v5  ;;  %145 = vmatpush.msra.mxu1 %v124_v4 }
  0x1c   :  { %201 = vmatpush.msra.mxu2 %v177_v27 }
  0x1d   :  { %146 = vmatpush.msra.mxu1 %v123_v7 }
  0x1e   :  { %235 = vmatmul.msk.f32.vlgmr.msra.gmra.mxu1 %vm127_vm1, %v95_v6  ;;  %202 = vmatpush.msra.mxu2 %v176_v28 }
  0x20   :  { %203 = vmatpush.msra.mxu2 %v175_v29 }
  0x8b   :  { %v172_v21 = vpop.permute.xlu0 %171 }
  0x98   :  { %v120_v8 = vpop.f32.mrf.mxu0 }
  0x99   :  { %183 = vrot.lane.b32.xlu1 %v120_v8, %s415_s4 }
  0x9b   :  { %v148_v9 = vpop.f32.mrf.mxu1 }
  0x9c   :  { %v151_v10 = vadd.f32 %v148_v9, %v120_v8 }
  0x9e   :  { %v236_v11 = vmul.f32 -1.442695, %v151_v10 }
  0xa0   :  { %249 = vpow2.f32 %v236_v11 }
  0xa6   :  { %v250_v12 = vpop.eup %249 }
  0xa7   :  { %v155_v13 = vadd.f32 1.0, %v250_v12 }
  0xa9   :  { %251 = vrcp.f32 %v155_v13  ;;  %v167_v17 = vand.u32 2147483648, %v155_v13  ;;  %v165_v19 = vand.u32 2147483647, %v155_v13  ;;  %vm161_vm3 = vweird.f32 %v155_v13 }
  0xab   :  { %v168_v22 = vor.u32 1.1754944e-38, %v167_v17  ;;  %vm166_vm5 = vcmp.eq.f32.partialorder %v165_v19, 8.507059e+37 }
  0xaf   :  { %v252_v14 = vpop.eup %251 }
  0xb0   :  { %v157_v15 = vmul.f32 %v252_v14, %v155_v13  ;;  %vm162_vm2 = vweird.f32 %v252_v14 }
  0xb1   :  { %vm163_vm4 = vmor %vm161_vm3, %vm162_vm2 }
  0xb2   :  { %v158_v16 = vsub.f32 1.0, %v157_v15 }
  0xb4   :  { %v159_v18 = vmul.f32 %v252_v14, %v158_v16 }
  0xb6   :  { %v160_v20 = vadd.f32 %v252_v14, %v159_v18 }
  0xb8   :  { %v164_v23 = vsel %vm163_vm4, %v252_v14, %v160_v20 }
  0xb9   :  { %v169_v24 = vsel %vm166_vm5, %v168_v22, %v164_v23 }
  0xba   :  { %v174_v25 = vmul.f32 %v172_v21, %v169_v24  ;;  %v209_v34 = vsub.f32 1.0, %v169_v24 }
  0xbc   :  { %180 = vrot.lane.b32.xlu0 %v174_v25, %s416_s17  ;;  %v210_v36 = vmul.f32 %v209_v34, %v95_v6 }
 0x10b   :  { %v184_v31 = vpop.permute.xlu1 %183 }
 0x12e   :  { %v181_v30 = vpop.permute.xlu0 %180 }
 0x12f   :  { %237 = vmatmul.msk.f32.vlgmr.msra.gmra.mxu2 %vm127_vm1, %v181_v30 }
 0x1b2   :  { %v205_v32 = vpop.f32.mrf.mxu2 }
 0x1b3   :  { %v206_v33 = vadd.f32 %v205_v32, %v184_v31 }
 0x1b5   :  { %253 = vtanh.f32 %v206_v33 }
 0x1bb   :  { %v254_v35 = vpop.eup %253 }
 0x1bc   :  { %v211_v37 = vmul.f32 %v254_v35, %v169_v24 }
 0x1be   :  { %v212_v38 = vadd.f32 %v211_v37, %v210_v36 }
 0x1c0   :  { %214 = vst.msk [vmem:[#allocation11] sm:$0xf] %vm213_vm6, %v212_v38 }
 0x1c1   :  { %225 = dma.vmem_to_hbm [thread:$0]  %s221_s19, 64, %s223_s22, [#allocation4]  }
 0x1c2   :  { %405 = dma.done.wait [#allocation4], 64  }
 0x1c3   :  { %406 = vsyncadd [#allocation4], 4294967232 }
 0x1c4   :  { %230 = vsyncpa [#allocation3], 1 }
 0x1c5   :  { %231 = vsyncpa [#allocation6], 1 }
 0x1c6   :  { %232 = vsyncpa [#allocation9], 1 }
 0x1c7   :  { %233 = vsyncpa [#allocation4], 1 }

</bundles_post_ra>
